<compile_context>
chip_gen: v7x
topology: tpu7x:2x2x1
jax: 0.10.0
libtpu: 0.0.40
codegen_flags: <defaults>
</compile_context>

<pallas_src>
import math

import jax
import jax.numpy as jnp
from jax.experimental import pallas as pl
from jax.experimental.pallas import tpu as pltpu


def _vmem_capacity_bytes():
    try:
        return int(pltpu.get_tpu_info().vmem_capacity_bytes)
    except Exception:
        return 64 << 20  # conservative fallback (v7x per-TensorCore VMEM)


def _pick_tile(N, B, emb_bytes, lab_bytes, cap=2048):
    """VMEM-aware tile width along N (multiple of 128 that divides N)."""
    assert N % 128 == 0
    vmem_cap = _vmem_capacity_bytes()
    # Budget for the pipelined streams: 2x double-buffered embed tile (BlockSpec)
    # plus 2x double-buffered label-row scratch.
    stream_budget = vmem_cap // 4
    per_lane = B * (2 * emb_bytes + 2 * lab_bytes)
    tn = min(cap, N, max(128, stream_budget // per_lane))
    tn -= tn % 128
    tn = max(tn, 128)
    while N % tn:
        tn -= 128
    return tn, vmem_cap


def nca_cross_entropy_pallas(embed_sim, labels_sim, indexes, margin=0.0, tn=None):
    """Pallas implementation of NCACrossEntropy.forward.

    Args:
      embed_sim:  [B, N] (f32 or bf16) similarity between batch embeddings and memory bank.
      labels_sim: [N, N] precomputed labels @ labels.T / num_classes buffer.
      indexes:    i32[B] memory-bank index of each mini-batch sample.
      margin:     float classification margin.
      tn:         tile width along N (multiple of 128 dividing N); None = auto.
    Returns:
      scalar f32 loss.
    """
    B, N = embed_sim.shape
    assert labels_sim.shape == (N, N), "labels_sim must be [N, N]"
    assert N % 128 == 0, "N must be a multiple of 128"

    emb_bytes = jnp.dtype(embed_sim.dtype).itemsize
    lab_bytes = jnp.dtype(labels_sim.dtype).itemsize
    auto_tn, vmem_cap = _pick_tile(N, B, emb_bytes, lab_bytes)
    if tn is None:
        tn = auto_tn
    assert tn % 128 == 0 and N % tn == 0

    per_lane = B * (2 * emb_bytes + 2 * lab_bytes)
    usage = per_lane * tn + (1 << 20)          # streams + accumulators/temps headroom
    vmem_limit = max(32 << 20, usage + (8 << 20))
    vmem_limit = min(vmem_limit, max(vmem_cap - (8 << 20), 32 << 20))

    ntiles = N // tn
    n_par = 2 if ntiles % 2 == 0 else 1        # 2-way split feeds both TCs on v7x
    nj = ntiles // n_par

    idx = indexes.astype(jnp.int32)            # scalar-prefetched (SMEM) for DMA addressing

    def kernel(idx_sref, emb_ref, lab_hbm, p_ref, z_ref, lab_buf, lab_sem):
        h = pl.program_id(0)
        j = pl.program_id(1)
        col0 = (h * nj + j) * tn               # element offset of this tile along N
        slot = j % 2

        def start_gather(col_start, s):
            # Gather B rows labels_sim[indexes[b], col_start:col_start+tn] into lab_buf[s].
            # All B copies of a slot signal the same (byte-counted) semaphore.
            start = pl.multiple_of(col_start, 128)
            if B <= 32:
                for b in range(B):
                    pltpu.make_async_copy(
                        lab_hbm.at[idx_sref[b], pl.ds(start, tn)],
                        lab_buf.at[s, b],
                        lab_sem.at[s],
                    ).start()
            else:
                def body(b, carry):
                    pltpu.make_async_copy(
                        lab_hbm.at[idx_sref[b], pl.ds(start, tn)],
                        lab_buf.at[s, b],
                        lab_sem.at[s],
                    ).start()
                    return carry
                jax.lax.fori_loop(0, B, body, 0, unroll=8)

        def wait_gather(s):
            # Single wait covering all B row copies of this slot: the dummy
            # descriptor's destination (B, tn) has exactly B * tn * itemsize
            # bytes, matching the sum of the B started copies.
            pltpu.make_async_copy(
                lab_hbm.at[pl.ds(0, B), pl.ds(0, tn)],
                lab_buf.at[s],
                lab_sem.at[s],
            ).wait()

        @pl.when(j == 0)
        def _():
            p_ref[...] = jnp.zeros_like(p_ref)
            z_ref[...] = jnp.zeros_like(z_ref)
            start_gather(col0, slot)           # slot == 0 here

        # Prefetch the NEXT tile's label rows BEFORE blocking on this tile.
        # Slot 1-slot was last read at step j-1 (already complete) -> no hazard,
        # and the SMEM index reads stay ahead of the wait below.
        @pl.when(j + 1 < nj)
        def _():
            start_gather(col0 + tn, 1 - slot)

        wait_gather(slot)

        # Stream per 128-lane group: exp + label upcast + multiply + accumulate
        # all stay in vregs; no full (B, tn) f32 temporaries.
        lab_view = lab_buf.at[slot]
        p_part = p_ref[...]
        z_part = z_ref[...]
        for k in range(tn // 128):
            sl = slice(k * 128, (k + 1) * 128)
            e = jnp.exp(emb_ref[:, sl].astype(jnp.float32))
            lab = lab_view[:, sl].astype(jnp.float32)
            p_part = p_part + e * lab
            z_part = z_part + e
        p_ref[...] = p_part
        z_ref[...] = z_part

    p_part, z_part = pl.pallas_call(
        kernel,
        out_shape=(
            jax.ShapeDtypeStruct((n_par, B, 128), jnp.float32),
            jax.ShapeDtypeStruct((n_par, B, 128), jnp.float32),
        ),
        grid_spec=pltpu.PrefetchScalarGridSpec(
            num_scalar_prefetch=1,
            grid=(n_par, nj),
            in_specs=[
                pl.BlockSpec((B, tn), lambda h, j, idx_p: (0, h * nj + j)),  # embed_sim tile
                pl.BlockSpec(memory_space=pl.ANY),                           # labels_sim (HBM)
            ],
            out_specs=[
                pl.BlockSpec((None, B, 128), lambda h, j, idx_p: (h, 0, 0)),  # p partials
                pl.BlockSpec((None, B, 128), lambda h, j, idx_p: (h, 0, 0)),  # Z partials
            ],
            scratch_shapes=[
                pltpu.VMEM((2, B, tn), labels_sim.dtype),   # double-buffered label rows
                pltpu.SemaphoreType.DMA((2,)),              # one shared sem per slot
            ],
        ),
        compiler_params=pltpu.CompilerParams(
            dimension_semantics=("parallel", "arbitrary"),
            vmem_limit_bytes=int(vmem_limit)),
    )(idx, embed_sim, labels_sim)

    # O(B) epilogue in plain JAX: cross-lane / cross-half reduce, self-index
    # correction (the original zeroes exp[b, indexes[b]] before summing), and
    # the loss formula.
    p = jnp.sum(p_part, axis=(0, 2))
    z = jnp.sum(z_part, axis=(0, 2))
    s_ii = embed_sim[jnp.arange(B), idx].astype(jnp.float32)
    e_ii = jnp.exp(s_ii)
    lab_ii = labels_sim[idx, idx].astype(jnp.float32)
    p = jnp.maximum(p - e_ii * lab_ii, 0.0)   # clamp guards f32 roundoff; exact 0 stays 0
    z = z - e_ii
    p_m = p * (1.0 / math.exp(margin))        # p / exp(margin)
    z_f = (z - p) + p_m                       # Z_exclude + p
    prob = p_m / z_f
    nonzero = prob != 0.0                     # masked_select(prob, prob.ne(0))
    contrib = jnp.where(nonzero, jnp.log(jnp.where(nonzero, prob, 1.0)), 0.0)
    return -jnp.sum(contrib) / B


def nca_cross_entropy_ref(embed_sim, labels_sim, indexes, margin=0.0):
    """Pure-JAX reference mirroring the PyTorch forward (for validation)."""
    B, _ = embed_sim.shape
    label_rows = labels_sim[indexes].astype(jnp.float32)
    e = jnp.exp(embed_sim.astype(jnp.float32))
    e = e.at[jnp.arange(B), indexes].set(0.0)
    p = (e * label_rows).sum(axis=1)
    Z = e.sum(axis=1)
    Z_excl = Z - p
    p_m = p / math.exp(margin)
    Zf = Z_excl + p_m
    prob = p_m / Zf
    nonzero = prob != 0.0
    contrib = jnp.where(nonzero, jnp.log(jnp.where(nonzero, prob, 1.0)), 0.0)
    return -contrib.sum() / B


def _check(name, got, want, rtol=1e-3):
    got = float(got)
    want = float(want)
    assert math.isfinite(got), f"{name}: non-finite loss {got}"
    assert abs(got - want) <= rtol * max(1.0, abs(want)), (
        f"{name}: pallas={got} ref={want}")


if __name__ == "__main__":
    # Small synthetic setup consistent with the module:
    #   training-set size N, num_classes C, mini-batch B.
    N, C, B = 512, 4, 8

    key = jax.random.PRNGKey(0)
    k_lab, k_emb, k_idx = jax.random.split(key, 3)

    # __init__ parameter setup: multi-hot labels and labels_sim = labels @ labels.T / C.
    labels = jax.random.bernoulli(k_lab, 0.3, (N, C)).astype(jnp.float32)
    labels_sim = (labels @ labels.T) / float(C)

    # forward() inputs.
    embed_sim = jax.random.normal(k_emb, (B, N), dtype=jnp.float32)
    indexes = jax.random.permutation(k_idx, N)[:B].astype(jnp.int32)

    # 1) Default VMEM-aware tile (single grid step at this size).
    ref = jax.block_until_ready(
        nca_cross_entropy_ref(embed_sim, labels_sim, indexes, margin=0.0))
    loss = jax.block_until_ready(
        nca_cross_entropy_pallas(embed_sim, labels_sim, indexes, margin=0.0))
    _check("auto-tile", loss, ref)

    # 2) Small tile + nonzero margin: exercises the multi-tile reduction, the
    #    prefetch-before-wait double-buffered row gather and the 2-way split
    #    (grid = (2, 2)).
    ref_m = jax.block_until_ready(
        nca_cross_entropy_ref(embed_sim, labels_sim, indexes, margin=0.25))
    loss_m = jax.block_until_ready(
        nca_cross_entropy_pallas(embed_sim, labels_sim, indexes, margin=0.25, tn=128))
    _check("tiled-margin", loss_m, ref_m)

    # 3) Native-dtype streaming: bf16 embed_sim halves the dominant HBM stream;
    #    math stays f32 in-kernel.  Compare against the f32 reference applied
    #    to the same rounded inputs.
    emb_bf16 = embed_sim.astype(jnp.bfloat16)
    ref_bf16 = jax.block_until_ready(
        nca_cross_entropy_ref(emb_bf16.astype(jnp.float32), labels_sim, indexes, margin=0.0))
    loss_bf16 = jax.block_until_ready(
        nca_cross_entropy_pallas(emb_bf16, labels_sim, indexes, margin=0.0))
    _check("bf16-embed", loss_bf16, ref_bf16)

    print("KERNEL_OK")
</pallas_src>

<mosaic_0001>
module attributes {stable_mosaic.version = 11 : i64} {
  func.func @kernel(%arg0: i32, %arg1: i32, %arg2: memref<8xi32, #tpu.memory_space<smem>>, %arg3: memref<8x512xf32, #tpu.memory_space<vmem>>, %arg4: memref<512x512xf32, #tpu.memory_space<any>>, %arg5: memref<1x8x128xf32, #tpu.memory_space<vmem>>, %arg6: memref<1x8x128xf32, #tpu.memory_space<vmem>>, %arg7: memref<2x8x512xf32, #tpu.memory_space<vmem>>, %arg8: memref<2x!tpu.dma_semaphore, #tpu.memory_space<semaphore_mem>>) attributes {dimension_semantics = [#tpu.dimension_semantics<parallel>, #tpu.dimension_semantics<arbitrary>], iteration_bounds = array<i64: 1, 1>, scalar_prefetch = 1 : i64, scratch_operands = 2 : i64, tpu.core_type = #tpu.core_type<tc>, window_params = [{transform_indices = @transform_0, window_bounds = array<i64: 8, 512>}, {}, {transform_indices = @transform_2, window_bounds = array<i64: 1, 8, 128>}, {transform_indices = @transform_3, window_bounds = array<i64: 1, 8, 128>}]} {
    %c1_i32 = arith.constant 1 : i32
    %0 = arith.muli %arg0, %c1_i32 : i32
    %1 = arith.addi %0, %arg1 : i32
    %c512_i32 = arith.constant 512 : i32
    %2 = arith.muli %1, %c512_i32 : i32
    %c2_i32 = arith.constant 2 : i32
    %c0_i32 = arith.constant 0 : i32
    %3 = arith.cmpi eq, %c2_i32, %c0_i32 : i32
    %c1_i32_0 = arith.constant 1 : i32
    %4 = arith.select %3, %c1_i32_0, %c2_i32 : i32
    %5 = arith.remsi %arg1, %4 : i32
    %c0_i32_1 = arith.constant 0 : i32
    %6 = arith.cmpi ne, %5, %c0_i32_1 : i32
    %c0_i32_2 = arith.constant 0 : i32
    %7 = arith.cmpi slt, %5, %c0_i32_2 : i32
    %c0_i32_3 = arith.constant 0 : i32
    %8 = arith.cmpi slt, %4, %c0_i32_3 : i32
    %9 = arith.xori %7, %8 : i1
    %10 = arith.andi %9, %6 : i1
    %11 = arith.addi %5, %4 : i32
    %12 = arith.select %10, %11, %5 : i32
    %c0_i32_4 = arith.constant 0 : i32
    %13 = arith.cmpi eq, %arg1, %c0_i32_4 : i32
    %14 = arith.extui %13 : i1 to i32
    %c0_i32_5 = arith.constant 0 : i32
    %15 = arith.cmpi ne, %14, %c0_i32_5 : i32
    scf.if %15 {
      %cst = arith.constant 0.000000e+00 : f32
      %67 = vector.broadcast %cst : f32 to vector<8x128xf32>
      %c0_45 = arith.constant 0 : index
      %c0_46 = arith.constant 0 : index
      %c0_47 = arith.constant 0 : index
      %68 = vector.load %arg5[%c0_45, %c0_46, %c0_47] : memref<1x8x128xf32, #tpu.memory_space<vmem>>, vector<1x8x128xf32>
      %69 = vector.shape_cast %68 : vector<1x8x128xf32> to vector<8x128xf32>
      %70 = vector.shape_cast %67 : vector<8x128xf32> to vector<1x8x128xf32>
      tpu.vector_store %arg5[%c0_45, %c0_46, %c0_47], %70 {strides = array<i32>} : memref<1x8x128xf32, #tpu.memory_space<vmem>>, vector<1x8x128xf32>,
      %cst_48 = arith.constant 0.000000e+00 : f32
      %71 = vector.broadcast %cst_48 : f32 to vector<8x128xf32>
      %c0_49 = arith.constant 0 : index
      %c0_50 = arith.constant 0 : index
      %c0_51 = arith.constant 0 : index
      %72 = vector.load %arg6[%c0_49, %c0_50, %c0_51] : memref<1x8x128xf32, #tpu.memory_space<vmem>>, vector<1x8x128xf32>
      %73 = vector.shape_cast %72 : vector<1x8x128xf32> to vector<8x128xf32>
      %74 = vector.shape_cast %71 : vector<8x128xf32> to vector<1x8x128xf32>
      tpu.vector_store %arg6[%c0_49, %c0_50, %c0_51], %74 {strides = array<i32>} : memref<1x8x128xf32, #tpu.memory_space<vmem>>, vector<1x8x128xf32>,
      %75 = tpu.assume_multiple %2, 128 : i32
      %c0_52 = arith.constant 0 : index
      %76 = memref.load %arg2[%c0_52] : memref<8xi32, #tpu.memory_space<smem>>
      %c0_i32_53 = arith.constant 0 : i32
      %77 = tpu.memref_slice %arg4[%76, %75] : memref<512x512xf32, #tpu.memory_space<any>> -> memref<1x512xf32, #tpu.memory_space<any>>
      %78 = tpu.memref_squeeze %77 : memref<1x512xf32, #tpu.memory_space<any>> -> memref<512xf32, #tpu.memory_space<any>>
      %c0_i32_54 = arith.constant 0 : i32
      %79 = tpu.memref_slice %arg7[%12, %c0_i32_53, %c0_i32_54] : memref<2x8x512xf32, #tpu.memory_space<vmem>> -> memref<1x1x512xf32, #tpu.memory_space<vmem>>
      %80 = tpu.memref_squeeze %79 : memref<1x1x512xf32, #tpu.memory_space<vmem>> -> memref<512xf32, #tpu.memory_space<vmem>>
      %81 = tpu.memref_slice %arg8[%12] : memref<2x!tpu.dma_semaphore, #tpu.memory_space<semaphore_mem>> -> memref<1x!tpu.dma_semaphore, #tpu.memory_space<semaphore_mem>>
      %82 = tpu.memref_squeeze %81 : memref<1x!tpu.dma_semaphore, #tpu.memory_space<semaphore_mem>> -> memref<!tpu.dma_semaphore, #tpu.memory_space<semaphore_mem>>
      tpu.enqueue_dma source(%78 : memref<512xf32, #tpu.memory_space<any>>) target(%80 : memref<512xf32, #tpu.memory_space<vmem>>) target_semaphore(%82 : memref<!tpu.dma_semaphore, #tpu.memory_space<semaphore_mem>>)
      %c1 = arith.constant 1 : index
      %83 = memref.load %arg2[%c1] : memref<8xi32, #tpu.memory_space<smem>>
      %c1_i32_55 = arith.constant 1 : i32
      %84 = tpu.memref_slice %arg4[%83, %75] : memref<512x512xf32, #tpu.memory_space<any>> -> memref<1x512xf32, #tpu.memory_space<any>>
      %85 = tpu.memref_squeeze %84 : memref<1x512xf32, #tpu.memory_space<any>> -> memref<512xf32, #tpu.memory_space<any>>
      %c0_i32_56 = arith.constant 0 : i32
      %86 = tpu.memref_slice %arg7[%12, %c1_i32_55, %c0_i32_56] : memref<2x8x512xf32, #tpu.memory_space<vmem>> -> memref<1x1x512xf32, #tpu.memory_space<vmem>>
      %87 = tpu.memref_squeeze %86 : memref<1x1x512xf32, #tpu.memory_space<vmem>> -> memref<512xf32, #tpu.memory_space<vmem>>
      %88 = tpu.memref_slice %arg8[%12] : memref<2x!tpu.dma_semaphore, #tpu.memory_space<semaphore_mem>> -> memref<1x!tpu.dma_semaphore, #tpu.memory_space<semaphore_mem>>
      %89 = tpu.memref_squeeze %88 : memref<1x!tpu.dma_semaphore, #tpu.memory_space<semaphore_mem>> -> memref<!tpu.dma_semaphore, #tpu.memory_space<semaphore_mem>>
      tpu.enqueue_dma source(%85 : memref<512xf32, #tpu.memory_space<any>>) target(%87 : memref<512xf32, #tpu.memory_space<vmem>>) target_semaphore(%89 : memref<!tpu.dma_semaphore, #tpu.memory_space<semaphore_mem>>)
      %c2 = arith.constant 2 : index
      %90 = memref.load %arg2[%c2] : memref<8xi32, #tpu.memory_space<smem>>
      %c2_i32_57 = arith.constant 2 : i32
      %91 = tpu.memref_slice %arg4[%90, %75] : memref<512x512xf32, #tpu.memory_space<any>> -> memref<1x512xf32, #tpu.memory_space<any>>
      %92 = tpu.memref_squeeze %91 : memref<1x512xf32, #tpu.memory_space<any>> -> memref<512xf32, #tpu.memory_space<any>>
      %c0_i32_58 = arith.constant 0 : i32
      %93 = tpu.memref_slice %arg7[%12, %c2_i32_57, %c0_i32_58] : memref<2x8x512xf32, #tpu.memory_space<vmem>> -> memref<1x1x512xf32, #tpu.memory_space<vmem>>
      %94 = tpu.memref_squeeze %93 : memref<1x1x512xf32, #tpu.memory_space<vmem>> -> memref<512xf32, #tpu.memory_space<vmem>>
      %95 = tpu.memref_slice %arg8[%12] : memref<2x!tpu.dma_semaphore, #tpu.memory_space<semaphore_mem>> -> memref<1x!tpu.dma_semaphore, #tpu.memory_space<semaphore_mem>>
      %96 = tpu.memref_squeeze %95 : memref<1x!tpu.dma_semaphore, #tpu.memory_space<semaphore_mem>> -> memref<!tpu.dma_semaphore, #tpu.memory_space<semaphore_mem>>
      tpu.enqueue_dma source(%92 : memref<512xf32, #tpu.memory_space<any>>) target(%94 : memref<512xf32, #tpu.memory_space<vmem>>) target_semaphore(%96 : memref<!tpu.dma_semaphore, #tpu.memory_space<semaphore_mem>>)
      %c3 = arith.constant 3 : index
      %97 = memref.load %arg2[%c3] : memref<8xi32, #tpu.memory_space<smem>>
      %c3_i32 = arith.constant 3 : i32
      %98 = tpu.memref_slice %arg4[%97, %75] : memref<512x512xf32, #tpu.memory_space<any>> -> memref<1x512xf32, #tpu.memory_space<any>>
      %99 = tpu.memref_squeeze %98 : memref<1x512xf32, #tpu.memory_space<any>> -> memref<512xf32, #tpu.memory_space<any>>
      %c0_i32_59 = arith.constant 0 : i32
      %100 = tpu.memref_slice %arg7[%12, %c3_i32, %c0_i32_59] : memref<2x8x512xf32, #tpu.memory_space<vmem>> -> memref<1x1x512xf32, #tpu.memory_space<vmem>>
      %101 = tpu.memref_squeeze %100 : memref<1x1x512xf32, #tpu.memory_space<vmem>> -> memref<512xf32, #tpu.memory_space<vmem>>
      %102 = tpu.memref_slice %arg8[%12] : memref<2x!tpu.dma_semaphore, #tpu.memory_space<semaphore_mem>> -> memref<1x!tpu.dma_semaphore, #tpu.memory_space<semaphore_mem>>
      %103 = tpu.memref_squeeze %102 : memref<1x!tpu.dma_semaphore, #tpu.memory_space<semaphore_mem>> -> memref<!tpu.dma_semaphore, #tpu.memory_space<semaphore_mem>>
      tpu.enqueue_dma source(%99 : memref<512xf32, #tpu.memory_space<any>>) target(%101 : memref<512xf32, #tpu.memory_space<vmem>>) target_semaphore(%103 : memref<!tpu.dma_semaphore, #tpu.memory_space<semaphore_mem>>)
      %c4 = arith.constant 4 : index
      %104 = memref.load %arg2[%c4] : memref<8xi32, #tpu.memory_space<smem>>
      %c4_i32 = arith.constant 4 : i32
      %105 = tpu.memref_slice %arg4[%104, %75] : memref<512x512xf32, #tpu.memory_space<any>> -> memref<1x512xf32, #tpu.memory_space<any>>
      %106 = tpu.memref_squeeze %105 : memref<1x512xf32, #tpu.memory_space<any>> -> memref<512xf32, #tpu.memory_space<any>>
      %c0_i32_60 = arith.constant 0 : i32
      %107 = tpu.memref_slice %arg7[%12, %c4_i32, %c0_i32_60] : memref<2x8x512xf32, #tpu.memory_space<vmem>> -> memref<1x1x512xf32, #tpu.memory_space<vmem>>
      %108 = tpu.memref_squeeze %107 : memref<1x1x512xf32, #tpu.memory_space<vmem>> -> memref<512xf32, #tpu.memory_space<vmem>>
      %109 = tpu.memref_slice %arg8[%12] : memref<2x!tpu.dma_semaphore, #tpu.memory_space<semaphore_mem>> -> memref<1x!tpu.dma_semaphore, #tpu.memory_space<semaphore_mem>>
      %110 = tpu.memref_squeeze %109 : memref<1x!tpu.dma_semaphore, #tpu.memory_space<semaphore_mem>> -> memref<!tpu.dma_semaphore, #tpu.memory_space<semaphore_mem>>
      tpu.enqueue_dma source(%106 : memref<512xf32, #tpu.memory_space<any>>) target(%108 : memref<512xf32, #tpu.memory_space<vmem>>) target_semaphore(%110 : memref<!tpu.dma_semaphore, #tpu.memory_space<semaphore_mem>>)
      %c5 = arith.constant 5 : index
      %111 = memref.load %arg2[%c5] : memref<8xi32, #tpu.memory_space<smem>>
      %c5_i32 = arith.constant 5 : i32
      %112 = tpu.memref_slice %arg4[%111, %75] : memref<512x512xf32, #tpu.memory_space<any>> -> memref<1x512xf32, #tpu.memory_space<any>>
      %113 = tpu.memref_squeeze %112 : memref<1x512xf32, #tpu.memory_space<any>> -> memref<512xf32, #tpu.memory_space<any>>
      %c0_i32_61 = arith.constant 0 : i32
      %114 = tpu.memref_slice %arg7[%12, %c5_i32, %c0_i32_61] : memref<2x8x512xf32, #tpu.memory_space<vmem>> -> memref<1x1x512xf32, #tpu.memory_space<vmem>>
      %115 = tpu.memref_squeeze %114 : memref<1x1x512xf32, #tpu.memory_space<vmem>> -> memref<512xf32, #tpu.memory_space<vmem>>
      %116 = tpu.memref_slice %arg8[%12] : memref<2x!tpu.dma_semaphore, #tpu.memory_space<semaphore_mem>> -> memref<1x!tpu.dma_semaphore, #tpu.memory_space<semaphore_mem>>
      %117 = tpu.memref_squeeze %116 : memref<1x!tpu.dma_semaphore, #tpu.memory_space<semaphore_mem>> -> memref<!tpu.dma_semaphore, #tpu.memory_space<semaphore_mem>>
      tpu.enqueue_dma source(%113 : memref<512xf32, #tpu.memory_space<any>>) target(%115 : memref<512xf32, #tpu.memory_space<vmem>>) target_semaphore(%117 : memref<!tpu.dma_semaphore, #tpu.memory_space<semaphore_mem>>)
      %c6 = arith.constant 6 : index
      %118 = memref.load %arg2[%c6] : memref<8xi32, #tpu.memory_space<smem>>
      %c6_i32 = arith.constant 6 : i32
      %119 = tpu.memref_slice %arg4[%118, %75] : memref<512x512xf32, #tpu.memory_space<any>> -> memref<1x512xf32, #tpu.memory_space<any>>
      %120 = tpu.memref_squeeze %119 : memref<1x512xf32, #tpu.memory_space<any>> -> memref<512xf32, #tpu.memory_space<any>>
      %c0_i32_62 = arith.constant 0 : i32
      %121 = tpu.memref_slice %arg7[%12, %c6_i32, %c0_i32_62] : memref<2x8x512xf32, #tpu.memory_space<vmem>> -> memref<1x1x512xf32, #tpu.memory_space<vmem>>
      %122 = tpu.memref_squeeze %121 : memref<1x1x512xf32, #tpu.memory_space<vmem>> -> memref<512xf32, #tpu.memory_space<vmem>>
      %123 = tpu.memref_slice %arg8[%12] : memref<2x!tpu.dma_semaphore, #tpu.memory_space<semaphore_mem>> -> memref<1x!tpu.dma_semaphore, #tpu.memory_space<semaphore_mem>>
      %124 = tpu.memref_squeeze %123 : memref<1x!tpu.dma_semaphore, #tpu.memory_space<semaphore_mem>> -> memref<!tpu.dma_semaphore, #tpu.memory_space<semaphore_mem>>
      tpu.enqueue_dma source(%120 : memref<512xf32, #tpu.memory_space<any>>) target(%122 : memref<512xf32, #tpu.memory_space<vmem>>) target_semaphore(%124 : memref<!tpu.dma_semaphore, #tpu.memory_space<semaphore_mem>>)
      %c7 = arith.constant 7 : index
      %125 = memref.load %arg2[%c7] : memref<8xi32, #tpu.memory_space<smem>>
      %c7_i32 = arith.constant 7 : i32
      %126 = tpu.memref_slice %arg4[%125, %75] : memref<512x512xf32, #tpu.memory_space<any>> -> memref<1x512xf32, #tpu.memory_space<any>>
      %127 = tpu.memref_squeeze %126 : memref<1x512xf32, #tpu.memory_space<any>> -> memref<512xf32, #tpu.memory_space<any>>
      %c0_i32_63 = arith.constant 0 : i32
      %128 = tpu.memref_slice %arg7[%12, %c7_i32, %c0_i32_63] : memref<2x8x512xf32, #tpu.memory_space<vmem>> -> memref<1x1x512xf32, #tpu.memory_space<vmem>>
      %129 = tpu.memref_squeeze %128 : memref<1x1x512xf32, #tpu.memory_space<vmem>> -> memref<512xf32, #tpu.memory_space<vmem>>
      %130 = tpu.memref_slice %arg8[%12] : memref<2x!tpu.dma_semaphore, #tpu.memory_space<semaphore_mem>> -> memref<1x!tpu.dma_semaphore, #tpu.memory_space<semaphore_mem>>
      %131 = tpu.memref_squeeze %130 : memref<1x!tpu.dma_semaphore, #tpu.memory_space<semaphore_mem>> -> memref<!tpu.dma_semaphore, #tpu.memory_space<semaphore_mem>>
      tpu.enqueue_dma source(%127 : memref<512xf32, #tpu.memory_space<any>>) target(%129 : memref<512xf32, #tpu.memory_space<vmem>>) target_semaphore(%131 : memref<!tpu.dma_semaphore, #tpu.memory_space<semaphore_mem>>)
    } else {
    }
    %c1_i32_6 = arith.constant 1 : i32
    %16 = arith.addi %arg1, %c1_i32_6 : i32
    %c1_i32_7 = arith.constant 1 : i32
    %17 = arith.cmpi slt, %16, %c1_i32_7 : i32
    %18 = arith.extui %17 : i1 to i32
    %c0_i32_8 = arith.constant 0 : i32
    %19 = arith.cmpi ne, %18, %c0_i32_8 : i32
    scf.if %19 {
      %c512_i32_45 = arith.constant 512 : i32
      %67 = arith.addi %2, %c512_i32_45 : i32
      %c1_i32_46 = arith.constant 1 : i32
      %68 = arith.subi %c1_i32_46, %12 : i32
      %69 = tpu.assume_multiple %67, 128 : i32
      %c0_47 = arith.constant 0 : index
      %70 = memref.load %arg2[%c0_47] : memref<8xi32, #tpu.memory_space<smem>>
      %c0_i32_48 = arith.constant 0 : i32
      %71 = tpu.memref_slice %arg4[%70, %69] : memref<512x512xf32, #tpu.memory_space<any>> -> memref<1x512xf32, #tpu.memory_space<any>>
      %72 = tpu.memref_squeeze %71 : memref<1x512xf32, #tpu.memory_space<any>> -> memref<512xf32, #tpu.memory_space<any>>
      %c0_i32_49 = arith.constant 0 : i32
      %73 = tpu.memref_slice %arg7[%68, %c0_i32_48, %c0_i32_49] : memref<2x8x512xf32, #tpu.memory_space<vmem>> -> memref<1x1x512xf32, #tpu.memory_space<vmem>>
      %74 = tpu.memref_squeeze %73 : memref<1x1x512xf32, #tpu.memory_space<vmem>> -> memref<512xf32, #tpu.memory_space<vmem>>
      %75 = tpu.memref_slice %arg8[%68] : memref<2x!tpu.dma_semaphore, #tpu.memory_space<semaphore_mem>> -> memref<1x!tpu.dma_semaphore, #tpu.memory_space<semaphore_mem>>
      %76 = tpu.memref_squeeze %75 : memref<1x!tpu.dma_semaphore, #tpu.memory_space<semaphore_mem>> -> memref<!tpu.dma_semaphore, #tpu.memory_space<semaphore_mem>>
      tpu.enqueue_dma source(%72 : memref<512xf32, #tpu.memory_space<any>>) target(%74 : memref<512xf32, #tpu.memory_space<vmem>>) target_semaphore(%76 : memref<!tpu.dma_semaphore, #tpu.memory_space<semaphore_mem>>)
      %c1 = arith.constant 1 : index
      %77 = memref.load %arg2[%c1] : memref<8xi32, #tpu.memory_space<smem>>
      %c1_i32_50 = arith.constant 1 : i32
      %78 = tpu.memref_slice %arg4[%77, %69] : memref<512x512xf32, #tpu.memory_space<any>> -> memref<1x512xf32, #tpu.memory_space<any>>
      %79 = tpu.memref_squeeze %78 : memref<1x512xf32, #tpu.memory_space<any>> -> memref<512xf32, #tpu.memory_space<any>>
      %c0_i32_51 = arith.constant 0 : i32
      %80 = tpu.memref_slice %arg7[%68, %c1_i32_50, %c0_i32_51] : memref<2x8x512xf32, #tpu.memory_space<vmem>> -> memref<1x1x512xf32, #tpu.memory_space<vmem>>
      %81 = tpu.memref_squeeze %80 : memref<1x1x512xf32, #tpu.memory_space<vmem>> -> memref<512xf32, #tpu.memory_space<vmem>>
      %82 = tpu.memref_slice %arg8[%68] : memref<2x!tpu.dma_semaphore, #tpu.memory_space<semaphore_mem>> -> memref<1x!tpu.dma_semaphore, #tpu.memory_space<semaphore_mem>>
      %83 = tpu.memref_squeeze %82 : memref<1x!tpu.dma_semaphore, #tpu.memory_space<semaphore_mem>> -> memref<!tpu.dma_semaphore, #tpu.memory_space<semaphore_mem>>
      tpu.enqueue_dma source(%79 : memref<512xf32, #tpu.memory_space<any>>) target(%81 : memref<512xf32, #tpu.memory_space<vmem>>) target_semaphore(%83 : memref<!tpu.dma_semaphore, #tpu.memory_space<semaphore_mem>>)
      %c2 = arith.constant 2 : index
      %84 = memref.load %arg2[%c2] : memref<8xi32, #tpu.memory_space<smem>>
      %c2_i32_52 = arith.constant 2 : i32
      %85 = tpu.memref_slice %arg4[%84, %69] : memref<512x512xf32, #tpu.memory_space<any>> -> memref<1x512xf32, #tpu.memory_space<any>>
      %86 = tpu.memref_squeeze %85 : memref<1x512xf32, #tpu.memory_space<any>> -> memref<512xf32, #tpu.memory_space<any>>
      %c0_i32_53 = arith.constant 0 : i32
      %87 = tpu.memref_slice %arg7[%68, %c2_i32_52, %c0_i32_53] : memref<2x8x512xf32, #tpu.memory_space<vmem>> -> memref<1x1x512xf32, #tpu.memory_space<vmem>>
      %88 = tpu.memref_squeeze %87 : memref<1x1x512xf32, #tpu.memory_space<vmem>> -> memref<512xf32, #tpu.memory_space<vmem>>
      %89 = tpu.memref_slice %arg8[%68] : memref<2x!tpu.dma_semaphore, #tpu.memory_space<semaphore_mem>> -> memref<1x!tpu.dma_semaphore, #tpu.memory_space<semaphore_mem>>
      %90 = tpu.memref_squeeze %89 : memref<1x!tpu.dma_semaphore, #tpu.memory_space<semaphore_mem>> -> memref<!tpu.dma_semaphore, #tpu.memory_space<semaphore_mem>>
      tpu.enqueue_dma source(%86 : memref<512xf32, #tpu.memory_space<any>>) target(%88 : memref<512xf32, #tpu.memory_space<vmem>>) target_semaphore(%90 : memref<!tpu.dma_semaphore, #tpu.memory_space<semaphore_mem>>)
      %c3 = arith.constant 3 : index
      %91 = memref.load %arg2[%c3] : memref<8xi32, #tpu.memory_space<smem>>
      %c3_i32 = arith.constant 3 : i32
      %92 = tpu.memref_slice %arg4[%91, %69] : memref<512x512xf32, #tpu.memory_space<any>> -> memref<1x512xf32, #tpu.memory_space<any>>
      %93 = tpu.memref_squeeze %92 : memref<1x512xf32, #tpu.memory_space<any>> -> memref<512xf32, #tpu.memory_space<any>>
      %c0_i32_54 = arith.constant 0 : i32
      %94 = tpu.memref_slice %arg7[%68, %c3_i32, %c0_i32_54] : memref<2x8x512xf32, #tpu.memory_space<vmem>> -> memref<1x1x512xf32, #tpu.memory_space<vmem>>
      %95 = tpu.memref_squeeze %94 : memref<1x1x512xf32, #tpu.memory_space<vmem>> -> memref<512xf32, #tpu.memory_space<vmem>>
      %96 = tpu.memref_slice %arg8[%68] : memref<2x!tpu.dma_semaphore, #tpu.memory_space<semaphore_mem>> -> memref<1x!tpu.dma_semaphore, #tpu.memory_space<semaphore_mem>>
      %97 = tpu.memref_squeeze %96 : memref<1x!tpu.dma_semaphore, #tpu.memory_space<semaphore_mem>> -> memref<!tpu.dma_semaphore, #tpu.memory_space<semaphore_mem>>
      tpu.enqueue_dma source(%93 : memref<512xf32, #tpu.memory_space<any>>) target(%95 : memref<512xf32, #tpu.memory_space<vmem>>) target_semaphore(%97 : memref<!tpu.dma_semaphore, #tpu.memory_space<semaphore_mem>>)
      %c4 = arith.constant 4 : index
      %98 = memref.load %arg2[%c4] : memref<8xi32, #tpu.memory_space<smem>>
      %c4_i32 = arith.constant 4 : i32
      %99 = tpu.memref_slice %arg4[%98, %69] : memref<512x512xf32, #tpu.memory_space<any>> -> memref<1x512xf32, #tpu.memory_space<any>>
      %100 = tpu.memref_squeeze %99 : memref<1x512xf32, #tpu.memory_space<any>> -> memref<512xf32, #tpu.memory_space<any>>
      %c0_i32_55 = arith.constant 0 : i32
      %101 = tpu.memref_slice %arg7[%68, %c4_i32, %c0_i32_55] : memref<2x8x512xf32, #tpu.memory_space<vmem>> -> memref<1x1x512xf32, #tpu.memory_space<vmem>>
      %102 = tpu.memref_squeeze %101 : memref<1x1x512xf32, #tpu.memory_space<vmem>> -> memref<512xf32, #tpu.memory_space<vmem>>
      %103 = tpu.memref_slice %arg8[%68] : memref<2x!tpu.dma_semaphore, #tpu.memory_space<semaphore_mem>> -> memref<1x!tpu.dma_semaphore, #tpu.memory_space<semaphore_mem>>
      %104 = tpu.memref_squeeze %103 : memref<1x!tpu.dma_semaphore, #tpu.memory_space<semaphore_mem>> -> memref<!tpu.dma_semaphore, #tpu.memory_space<semaphore_mem>>
      tpu.enqueue_dma source(%100 : memref<512xf32, #tpu.memory_space<any>>) target(%102 : memref<512xf32, #tpu.memory_space<vmem>>) target_semaphore(%104 : memref<!tpu.dma_semaphore, #tpu.memory_space<semaphore_mem>>)
      %c5 = arith.constant 5 : index
      %105 = memref.load %arg2[%c5] : memref<8xi32, #tpu.memory_space<smem>>
      %c5_i32 = arith.constant 5 : i32
      %106 = tpu.memref_slice %arg4[%105, %69] : memref<512x512xf32, #tpu.memory_space<any>> -> memref<1x512xf32, #tpu.memory_space<any>>
      %107 = tpu.memref_squeeze %106 : memref<1x512xf32, #tpu.memory_space<any>> -> memref<512xf32, #tpu.memory_space<any>>
      %c0_i32_56 = arith.constant 0 : i32
      %108 = tpu.memref_slice %arg7[%68, %c5_i32, %c0_i32_56] : memref<2x8x512xf32, #tpu.memory_space<vmem>> -> memref<1x1x512xf32, #tpu.memory_space<vmem>>
      %109 = tpu.memref_squeeze %108 : memref<1x1x512xf32, #tpu.memory_space<vmem>> -> memref<512xf32, #tpu.memory_space<vmem>>
      %110 = tpu.memref_slice %arg8[%68] : memref<2x!tpu.dma_semaphore, #tpu.memory_space<semaphore_mem>> -> memref<1x!tpu.dma_semaphore, #tpu.memory_space<semaphore_mem>>
      %111 = tpu.memref_squeeze %110 : memref<1x!tpu.dma_semaphore, #tpu.memory_space<semaphore_mem>> -> memref<!tpu.dma_semaphore, #tpu.memory_space<semaphore_mem>>
      tpu.enqueue_dma source(%107 : memref<512xf32, #tpu.memory_space<any>>) target(%109 : memref<512xf32, #tpu.memory_space<vmem>>) target_semaphore(%111 : memref<!tpu.dma_semaphore, #tpu.memory_space<semaphore_mem>>)
      %c6 = arith.constant 6 : index
      %112 = memref.load %arg2[%c6] : memref<8xi32, #tpu.memory_space<smem>>
      %c6_i32 = arith.constant 6 : i32
      %113 = tpu.memref_slice %arg4[%112, %69] : memref<512x512xf32, #tpu.memory_space<any>> -> memref<1x512xf32, #tpu.memory_space<any>>
      %114 = tpu.memref_squeeze %113 : memref<1x512xf32, #tpu.memory_space<any>> -> memref<512xf32, #tpu.memory_space<any>>
      %c0_i32_57 = arith.constant 0 : i32
      %115 = tpu.memref_slice %arg7[%68, %c6_i32, %c0_i32_57] : memref<2x8x512xf32, #tpu.memory_space<vmem>> -> memref<1x1x512xf32, #tpu.memory_space<vmem>>
      %116 = tpu.memref_squeeze %115 : memref<1x1x512xf32, #tpu.memory_space<vmem>> -> memref<512xf32, #tpu.memory_space<vmem>>
      %117 = tpu.memref_slice %arg8[%68] : memref<2x!tpu.dma_semaphore, #tpu.memory_space<semaphore_mem>> -> memref<1x!tpu.dma_semaphore, #tpu.memory_space<semaphore_mem>>
      %118 = tpu.memref_squeeze %117 : memref<1x!tpu.dma_semaphore, #tpu.memory_space<semaphore_mem>> -> memref<!tpu.dma_semaphore, #tpu.memory_space<semaphore_mem>>
      tpu.enqueue_dma source(%114 : memref<512xf32, #tpu.memory_space<any>>) target(%116 : memref<512xf32, #tpu.memory_space<vmem>>) target_semaphore(%118 : memref<!tpu.dma_semaphore, #tpu.memory_space<semaphore_mem>>)
      %c7 = arith.constant 7 : index
      %119 = memref.load %arg2[%c7] : memref<8xi32, #tpu.memory_space<smem>>
      %c7_i32 = arith.constant 7 : i32
      %120 = tpu.memref_slice %arg4[%119, %69] : memref<512x512xf32, #tpu.memory_space<any>> -> memref<1x512xf32, #tpu.memory_space<any>>
      %121 = tpu.memref_squeeze %120 : memref<1x512xf32, #tpu.memory_space<any>> -> memref<512xf32, #tpu.memory_space<any>>
      %c0_i32_58 = arith.constant 0 : i32
      %122 = tpu.memref_slice %arg7[%68, %c7_i32, %c0_i32_58] : memref<2x8x512xf32, #tpu.memory_space<vmem>> -> memref<1x1x512xf32, #tpu.memory_space<vmem>>
      %123 = tpu.memref_squeeze %122 : memref<1x1x512xf32, #tpu.memory_space<vmem>> -> memref<512xf32, #tpu.memory_space<vmem>>
      %124 = tpu.memref_slice %arg8[%68] : memref<2x!tpu.dma_semaphore, #tpu.memory_space<semaphore_mem>> -> memref<1x!tpu.dma_semaphore, #tpu.memory_space<semaphore_mem>>
      %125 = tpu.memref_squeeze %124 : memref<1x!tpu.dma_semaphore, #tpu.memory_space<semaphore_mem>> -> memref<!tpu.dma_semaphore, #tpu.memory_space<semaphore_mem>>
      tpu.enqueue_dma source(%121 : memref<512xf32, #tpu.memory_space<any>>) target(%123 : memref<512xf32, #tpu.memory_space<vmem>>) target_semaphore(%125 : memref<!tpu.dma_semaphore, #tpu.memory_space<semaphore_mem>>)
    } else {
    }
    %c0_i32_9 = arith.constant 0 : i32
    %c0_i32_10 = arith.constant 0 : i32
    %20 = tpu.memref_slice %arg4[%c0_i32_9, %c0_i32_10] : memref<512x512xf32, #tpu.memory_space<any>> -> memref<8x512xf32, #tpu.memory_space<any>>
    %c0_i32_11 = arith.constant 0 : i32
    %c0_i32_12 = arith.constant 0 : i32
    %21 = tpu.memref_slice %arg7[%12, %c0_i32_11, %c0_i32_12] : memref<2x8x512xf32, #tpu.memory_space<vmem>> -> memref<1x8x512xf32, #tpu.memory_space<vmem>>
    %22 = tpu.memref_squeeze %21 : memref<1x8x512xf32, #tpu.memory_space<vmem>> -> memref<8x512xf32, #tpu.memory_space<vmem>>
    %23 = tpu.memref_slice %arg8[%12] : memref<2x!tpu.dma_semaphore, #tpu.memory_space<semaphore_mem>> -> memref<1x!tpu.dma_semaphore, #tpu.memory_space<semaphore_mem>>
    %24 = tpu.memref_squeeze %23 : memref<1x!tpu.dma_semaphore, #tpu.memory_space<semaphore_mem>> -> memref<!tpu.dma_semaphore, #tpu.memory_space<semaphore_mem>>
    tpu.wait_dma2 semaphore(%24 : memref<!tpu.dma_semaphore, #tpu.memory_space<semaphore_mem>>) src(%20 : memref<8x512xf32, #tpu.memory_space<any>>) dst(%22 : memref<8x512xf32, #tpu.memory_space<vmem>>)
    %c0 = arith.constant 0 : index
    %c0_13 = arith.constant 0 : index
    %c0_14 = arith.constant 0 : index
    %25 = vector.load %arg5[%c0, %c0_13, %c0_14] : memref<1x8x128xf32, #tpu.memory_space<vmem>>, vector<1x8x128xf32>
    %26 = vector.shape_cast %25 : vector<1x8x128xf32> to vector<8x128xf32>
    %c0_15 = arith.constant 0 : index
    %c0_16 = arith.constant 0 : index
    %c0_17 = arith.constant 0 : index
    %27 = vector.load %arg6[%c0_15, %c0_16, %c0_17] : memref<1x8x128xf32, #tpu.memory_space<vmem>>, vector<1x8x128xf32>
    %28 = vector.shape_cast %27 : vector<1x8x128xf32> to vector<8x128xf32>
    %c0_18 = arith.constant 0 : index
    %c0_19 = arith.constant 0 : index
    %29 = vector.load %arg3[%c0_18, %c0_19] : memref<8x512xf32, #tpu.memory_space<vmem>>, vector<8x128xf32>
    %30 = math.exp %29 : vector<8x128xf32>
    %c0_i32_20 = arith.constant 0 : i32
    %c0_i32_21 = arith.constant 0 : i32
    %31 = tpu.memref_slice %arg7[%12, %c0_i32_20, %c0_i32_21] : memref<2x8x512xf32, #tpu.memory_space<vmem>> -> memref<1x8x512xf32, #tpu.memory_space<vmem>>
    %32 = tpu.memref_squeeze %31 : memref<1x8x512xf32, #tpu.memory_space<vmem>> -> memref<8x512xf32, #tpu.memory_space<vmem>>
    %c0_22 = arith.constant 0 : index
    %c0_23 = arith.constant 0 : index
    %33 = vector.load %32[%c0_22, %c0_23] : memref<8x512xf32, #tpu.memory_space<vmem>>, vector<8x128xf32>
    %34 = arith.mulf %30, %33 : vector<8x128xf32>
    %35 = arith.addf %26, %34 : vector<8x128xf32>
    %36 = arith.addf %28, %30 : vector<8x128xf32>
    %c0_24 = arith.constant 0 : index
    %c128 = arith.constant 128 : index
    %37 = vector.load %arg3[%c0_24, %c128] : memref<8x512xf32, #tpu.memory_space<vmem>>, vector<8x128xf32>
    %38 = math.exp %37 : vector<8x128xf32>
    %c0_i32_25 = arith.constant 0 : i32
    %c0_i32_26 = arith.constant 0 : i32
    %39 = tpu.memref_slice %arg7[%12, %c0_i32_25, %c0_i32_26] : memref<2x8x512xf32, #tpu.memory_space<vmem>> -> memref<1x8x512xf32, #tpu.memory_space<vmem>>
    %40 = tpu.memref_squeeze %39 : memref<1x8x512xf32, #tpu.memory_space<vmem>> -> memref<8x512xf32, #tpu.memory_space<vmem>>
    %c0_27 = arith.constant 0 : index
    %c128_28 = arith.constant 128 : index
    %41 = vector.load %40[%c0_27, %c128_28] : memref<8x512xf32, #tpu.memory_space<vmem>>, vector<8x128xf32>
    %42 = arith.mulf %38, %41 : vector<8x128xf32>
    %43 = arith.addf %35, %42 : vector<8x128xf32>
    %44 = arith.addf %36, %38 : vector<8x128xf32>
    %c0_29 = arith.constant 0 : index
    %c256 = arith.constant 256 : index
    %45 = vector.load %arg3[%c0_29, %c256] : memref<8x512xf32, #tpu.memory_space<vmem>>, vector<8x128xf32>
    %46 = math.exp %45 : vector<8x128xf32>
    %c0_i32_30 = arith.constant 0 : i32
    %c0_i32_31 = arith.constant 0 : i32
    %47 = tpu.memref_slice %arg7[%12, %c0_i32_30, %c0_i32_31] : memref<2x8x512xf32, #tpu.memory_space<vmem>> -> memref<1x8x512xf32, #tpu.memory_space<vmem>>
    %48 = tpu.memref_squeeze %47 : memref<1x8x512xf32, #tpu.memory_space<vmem>> -> memref<8x512xf32, #tpu.memory_space<vmem>>
    %c0_32 = arith.constant 0 : index
    %c256_33 = arith.constant 256 : index
    %49 = vector.load %48[%c0_32, %c256_33] : memref<8x512xf32, #tpu.memory_space<vmem>>, vector<8x128xf32>
    %50 = arith.mulf %46, %49 : vector<8x128xf32>
    %51 = arith.addf %43, %50 : vector<8x128xf32>
    %52 = arith.addf %44, %46 : vector<8x128xf32>
    %c0_34 = arith.constant 0 : index
    %c384 = arith.constant 384 : index
    %53 = vector.load %arg3[%c0_34, %c384] : memref<8x512xf32, #tpu.memory_space<vmem>>, vector<8x128xf32>
    %54 = math.exp %53 : vector<8x128xf32>
    %c0_i32_35 = arith.constant 0 : i32
    %c0_i32_36 = arith.constant 0 : i32
    %55 = tpu.memref_slice %arg7[%12, %c0_i32_35, %c0_i32_36] : memref<2x8x512xf32, #tpu.memory_space<vmem>> -> memref<1x8x512xf32, #tpu.memory_space<vmem>>
    %56 = tpu.memref_squeeze %55 : memref<1x8x512xf32, #tpu.memory_space<vmem>> -> memref<8x512xf32, #tpu.memory_space<vmem>>
    %c0_37 = arith.constant 0 : index
    %c384_38 = arith.constant 384 : index
    %57 = vector.load %56[%c0_37, %c384_38] : memref<8x512xf32, #tpu.memory_space<vmem>>, vector<8x128xf32>
    %58 = arith.mulf %54, %57 : vector<8x128xf32>
    %59 = arith.addf %51, %58 : vector<8x128xf32>
    %60 = arith.addf %52, %54 : vector<8x128xf32>
    %c0_39 = arith.constant 0 : index
    %c0_40 = arith.constant 0 : index
    %c0_41 = arith.constant 0 : index
    %61 = vector.load %arg5[%c0_39, %c0_40, %c0_41] : memref<1x8x128xf32, #tpu.memory_space<vmem>>, vector<1x8x128xf32>
    %62 = vector.shape_cast %61 : vector<1x8x128xf32> to vector<8x128xf32>
    %63 = vector.shape_cast %59 : vector<8x128xf32> to vector<1x8x128xf32>
    tpu.vector_store %arg5[%c0_39, %c0_40, %c0_41], %63 {strides = array<i32>} : memref<1x8x128xf32, #tpu.memory_space<vmem>>, vector<1x8x128xf32>,
    %c0_42 = arith.constant 0 : index
    %c0_43 = arith.constant 0 : index
    %c0_44 = arith.constant 0 : index
    %64 = vector.load %arg6[%c0_42, %c0_43, %c0_44] : memref<1x8x128xf32, #tpu.memory_space<vmem>>, vector<1x8x128xf32>
    %65 = vector.shape_cast %64 : vector<1x8x128xf32> to vector<8x128xf32>
    %66 = vector.shape_cast %60 : vector<8x128xf32> to vector<1x8x128xf32>
    tpu.vector_store %arg6[%c0_42, %c0_43, %c0_44], %66 {strides = array<i32>} : memref<1x8x128xf32, #tpu.memory_space<vmem>>, vector<1x8x128xf32>,
    return
  }
  func.func @transform_0(%arg0: i32, %arg1: i32, %arg2: memref<8xi32, #tpu.memory_space<smem>>) -> (i32, i32) {
    %c1_i32 = arith.constant 1 : i32
    %0 = arith.muli %arg0, %c1_i32 : i32
    %1 = arith.addi %0, %arg1 : i32
    %c0_i32 = arith.constant 0 : i32
    %c0_i32_0 = arith.constant 0 : i32
    return %c0_i32, %1 : i32, i32
  }
  func.func @transform_2(%arg0: i32, %arg1: i32, %arg2: memref<8xi32, #tpu.memory_space<smem>>) -> (i32, i32, i32) {
    %c0_i32 = arith.constant 0 : i32
    %c0_i32_0 = arith.constant 0 : i32
    %c0_i32_1 = arith.constant 0 : i32
    return %arg0, %c0_i32, %c0_i32_0 : i32, i32, i32
  }
  func.func @transform_3(%arg0: i32, %arg1: i32, %arg2: memref<8xi32, #tpu.memory_space<smem>>) -> (i32, i32, i32) {
    %c0_i32 = arith.constant 0 : i32
    %c0_i32_0 = arith.constant 0 : i32
    %c0_i32_1 = arith.constant 0 : i32
    return %arg0, %c0_i32, %c0_i32_0 : i32, i32, i32
  }
}

</mosaic_0001>

<bundles_post_ra>
// kernel: tpu_custom_call.1
= control target key start
LH: loop header
LB: loop body
LE: loop exit
PB: predicated region body
PF: predicated region fallthrough
CT: control target
= control target key end

     0   :  { %s1146_s0 = inlined_call_operand.hbm [shape: s32[8], index: 0, kind: input, shape index: {}]   ;;  %s1147_s1 = inlined_call_operand.hbm [shape: f32[8,512], index: 1, kind: input, shape index: {}]   ;;  %s1148_s2 = inlined_call_operand.hbm [shape: f32[512,512], index: 2, kind: input, shape index: {}]   ;;  %s1149_s3 = inlined_call_operand.hbm [shape: f32[1,8,128], index: 3, kind: output, shape index: {0}]   ;;  %s1150_s4 = inlined_call_operand.hbm [shape: f32[1,8,128], index: 4, kind: output, shape index: {1}]  }
   0x1   :  { %s623_s17 = scalar_lea.hbm %s1146_s0, 16 }
   0x2   :  { %p624_p0 = scmp.ne.s32.totalorder %s1146_s0, %s623_s17  ;;  %p627_p1 = scmp.lt.u32.totalorder %s623_s17, %s1146_s0 }
   0x4   :  { %p629_p2 = pnand %p627_p1, %p624_p0 }
   0x6   :  { %632 = shalt.err (!%p629_p2)  }
   0x7   :  { %s901_s22 = smov [#allocation5]  }
   0x8   :  { %11 = dma.hbm_to_smem %s1146_s0, 16, %s901_s22, [#allocation4] }
   0x9   :  { %891 = dma.done.wait [#allocation4], 16 }
   0xa   :  { %892 = vsyncadd [#allocation4], 4294967280 }
   0xb   :  { %13 = sfence }
   0xc   :  { %14 = vsyncpa [#allocation7], 0 }
   0xd   :  { %15 = vsyncpa [#allocation8], 0 }
   0xe   :  { %16 = vsyncpa [#allocation11], 0  ;;  %s902_s25 = smov [#allocation6]   ;;  %s633_s29 = scalar_lea.hbm %s1147_s1, 512 }
   0xf   :  { %s27_s26 = sshll.u32 %s902_s25, 4  ;;  %p634_p3 = scmp.ne.s32.totalorder %s1147_s1, %s633_s29  ;;  %s28_s26 = int_to_ptr.vmem [resolvable:$true] %s27_s26 }
  0x10   :  { %p637_p4 = scmp.lt.u32.totalorder %s633_s29, %s1147_s1 }
  0x12   :  { %p639_p5 = pnand %p637_p4, %p634_p3 }
  0x14   :  { %642 = shalt.err (!%p639_p5)
}
  0x15   :  { %s643_s0 = scalar_lea.vmem %s28_s26, 512  ;;  %p648_p7 = scmp.lt.s32.totalorder %s28_s26, %s28_s26 }
  0x16   :  { %p644_p6 = scmp.ne.s32.totalorder %s28_s26, %s643_s0  ;;  %p649_p8 = scmp.lt.s32.totalorder %s643_s0, %s643_s0 }
  0x18   :  { %p650_p9 = por %p649_p8, %p648_p7 }
  0x1a   :  { %p651_p10 = pnand %p650_p9, %p644_p6 }
  0x1c   :  { %654 = shalt.err (!%p651_p10)
}
  0x1d   :  { %30 = dma.hbm_to_vmem [thread:$0]  %s1147_s1, 512, %s28_s26, [#allocation7]  }
  0x1e   :  { %893 = dma.done.wait [#allocation7], 512  }
  0x1f   :  { %894 = vsyncadd [#allocation7], 4294966784  ;;  %s52_s10 = sld [smem:[#allocation5]]  ;;  %s903_s11 = smov [#allocation2]   ;;  %v904_v0 = vmov 0.0  }
  0x20   :  { %s67_s12 = sshll.u32 %s903_s11, 4  ;;  %50 = vst [vmem:[#allocation9] sm:$0xff] %v904_v0  ;;  %51 = vst [vmem:[#allocation10] sm:$0xff] %v904_v0  ;;  %s967_s13 = sld [smem:[#allocation5 + $0x1]]  ;;  %s965_s12 = int_to_ptr.vmem [resolvable:$true] %s67_s12 }
  0x21   :  { %s905_s14 = smov [#allocation2 + $0x1]   ;;  %s969_s16 = sld [smem:[#allocation5 + $0x2]] }
  0x22   :  { %s82_s15 = sshll.u32 %s905_s14, 4  ;;  %s906_s1 = smov [#allocation2 + $0x2]   ;;  %s971_s15 = int_to_ptr.vmem [resolvable:$true] %s82_s15 }
  0x23   :  { %s97_s17 = sshll.u32 %s906_s1, 4  ;;  %s973_s18 = sld [smem:[#allocation5 + $0x3]]  ;;  %s975_s17 = int_to_ptr.vmem [resolvable:$true] %s97_s17 }
  0x24   :  { %s985_s7 = scalar_lea.hbm %s1148_s2, 32768 }
  0x25   :  { %s53_s19 = sshrl.u32 %s52_s10, 3  ;;  %s54_s20 = sand.u32 7, %s52_s10  }
  0x26   :  { %s536_s21 = sshll.u32 %s53_s19, 5  ;;  %s72_s23 = sshrl.u32 %s967_s13, 3 }
  0x27   :  { %s56_s22 = sadd.s32 %s536_s21, %s54_s20  ;;  %s73_s25 = sand.u32 7, %s967_s13  }
  0x28   :  { %s537_s24 = sshll.u32 %s56_s22, 4  ;;  %s539_s29 = sshll.u32 %s72_s23, 5 }
  0x29   :  { %s62_s28 = scalar_lea.hbm %s1148_s2, %s537_s24 }
  0x2a   :  { %s655_s30 = scalar_lea.hbm %s62_s28, 64  ;;  %p658_p12 = scmp.lt.u32.totalorder %s62_s28, %s1148_s2 }
  0x2b   :  { %p656_p11 = scmp.ne.s32.totalorder %s62_s28, %s655_s30  ;;  %p659_p13 = scmp.lt.u32.totalorder %s985_s7, %s655_s30 }
  0x2c   :  { %p661_p1 = scmp.lt.u32.totalorder %s655_s30, %s62_s28 }
  0x2d   :  { %p660_p0 = por %p659_p13, %p658_p12 }
  0x2f   :  { %p662_p2 = por %p661_p1, %p660_p0 }
  0x31   :  { %p663_p3 = pnand %p662_p2, %p656_p11 }
  0x33   :  { %666 = shalt.err (!%p663_p3)  }
  0x34   :  { %s667_s9 = scalar_lea.vmem %s965_s12, 64  ;;  %s994_s10 = scalar_lea.vmem %s965_s12, 1024 }
  0x35   :  { %p668_p4 = scmp.ne.s32.totalorder %s965_s12, %s667_s9  ;;  %p672_p5 = scmp.lt.s32.totalorder %s965_s12, %s965_s12 }
  0x36   :  { %p673_p6 = scmp.lt.s32.totalorder %s994_s10, %s667_s9 }
  0x38   :  { %p674_p7 = por %p673_p6, %p672_p5 }
  0x3a   :  { %p675_p8 = pnand %p674_p7, %p668_p4 }
  0x3c   :  { %678 = shalt.err (!%p675_p8)  }
  0x3d   :  { %s907_s11 = smov 128   ;;  %s908_s13 = smov 1  }
  0x3e   :  { %70 = dma.hbm_to_vmem [thread:$0]  %s62_s28, 64, %s965_s12, [#allocation3], %s907_s11, %s907_s11, %s908_s13 }
  0x3f   :  { %s75_s14 = sadd.s32 %s539_s29, %s73_s25  ;;  %s87_s1 = sshrl.u32 %s969_s16, 3 }
  0x40   :  { %s540_s19 = sshll.u32 %s75_s14, 4  ;;  %s88_s20 = sand.u32 7, %s969_s16  }
  0x41   :  { %s78_s23 = scalar_lea.hbm %s1148_s2, %s540_s19  ;;  %s542_s24 = sshll.u32 %s87_s1, 5 }
  0x42   :  { %s679_s26 = scalar_lea.hbm %s78_s23, 64  ;;  %p682_p10 = scmp.lt.u32.totalorder %s78_s23, %s1148_s2 }
  0x43   :  { %p680_p9 = scmp.ne.s32.totalorder %s78_s23, %s679_s26  ;;  %p683_p11 = scmp.lt.u32.totalorder %s985_s7, %s679_s26 }
  0x44   :  { %p685_p13 = scmp.lt.u32.totalorder %s679_s26, %s78_s23 }
  0x45   :  { %p684_p12 = por %p683_p11, %p682_p10 }
  0x47   :  { %p686_p0 = por %p685_p13, %p684_p12 }
  0x49   :  { %p687_p1 = pnand %p686_p0, %p680_p9 }
  0x4b   :  { %690 = shalt.err (!%p687_p1)  }
  0x4c   :  { %s691_s16 = scalar_lea.vmem %s971_s15, 64  ;;  %p696_p3 = scmp.lt.s32.totalorder %s971_s15, %s965_s12 }
  0x4d   :  { %p692_p2 = scmp.ne.s32.totalorder %s971_s15, %s691_s16  ;;  %p697_p4 = scmp.lt.s32.totalorder %s994_s10, %s691_s16 }
  0x4f   :  { %p698_p5 = por %p697_p4, %p696_p3 }
  0x51   :  { %p699_p6 = pnand %p698_p5, %p692_p2 }
  0x53   :  { %702 = shalt.err (!%p699_p6)  }
  0x54   :  { %85 = dma.hbm_to_vmem [thread:$0]  %s78_s23, 64, %s971_s15, [#allocation3], %s907_s11, %s907_s11, %s908_s13 }
  0x55   :  { %s90_s25 = sadd.s32 %s542_s24, %s88_s20  ;;  %s102_s28 = sshrl.u32 %s973_s18, 3 }
  0x56   :  { %s543_s29 = sshll.u32 %s90_s25, 4  ;;  %s103_s5 = sand.u32 7, %s973_s18  }
  0x57   :  { %s93_s8 = scalar_lea.hbm %s1148_s2, %s543_s29  ;;  %s545_s9 = sshll.u32 %s102_s28, 5 }
  0x58   :  { %s703_s14 = scalar_lea.hbm %s93_s8, 64  ;;  %p706_p8 = scmp.lt.u32.totalorder %s93_s8, %s1148_s2 }
  0x59   :  { %p704_p7 = scmp.ne.s32.totalorder %s93_s8, %s703_s14  ;;  %p707_p9 = scmp.lt.u32.totalorder %s985_s7, %s703_s14 }
  0x5a   :  { %p709_p11 = scmp.lt.u32.totalorder %s703_s14, %s93_s8 }
  0x5b   :  { %p708_p10 = por %p707_p9, %p706_p8 }
  0x5d   :  { %p710_p12 = por %p709_p11, %p708_p10 }
  0x5f   :  { %p711_p13 = pnand %p710_p12, %p704_p7 }
  0x61   :  { %714 = shalt.err (!%p711_p13)  }
  0x62   :  { %s715_s15 = scalar_lea.vmem %s975_s17, 64  ;;  %p720_p1 = scmp.lt.s32.totalorder %s975_s17, %s965_s12 }
  0x63   :  { %p716_p0 = scmp.ne.s32.totalorder %s975_s17, %s715_s15  ;;  %p721_p2 = scmp.lt.s32.totalorder %s994_s10, %s715_s15 }
  0x65   :  { %p722_p3 = por %p721_p2, %p720_p1 }
  0x67   :  { %p723_p4 = pnand %p722_p3, %p716_p0 }
  0x69   :  { %726 = shalt.err (!%p723_p4)  }
  0x6a   :  { %100 = dma.hbm_to_vmem [thread:$0]  %s93_s8, 64, %s975_s17, [#allocation3], %s907_s11, %s907_s11, %s908_s13 }
  0x6b   :  { %s105_s18 = sadd.s32 %s545_s9, %s103_s5  ;;  %s909_s21 = smov [#allocation2 + $0x3]  }
  0x6c   :  { %s546_s20 = sshll.u32 %s105_s18, 4  ;;  %s112_s22 = sshll.u32 %s909_s21, 4  ;;  %s113_s22 = int_to_ptr.vmem [resolvable:$true] %s112_s22 }
  0x6d   :  { %s108_s26 = scalar_lea.hbm %s1148_s2, %s546_s20 }
  0x6e   :  { %s727_s27 = scalar_lea.hbm %s108_s26, 64  ;;  %p730_p6 = scmp.lt.u32.totalorder %s108_s26, %s1148_s2 }
  0x6f   :  { %p728_p5 = scmp.ne.s32.totalorder %s108_s26, %s727_s27  ;;  %p731_p7 = scmp.lt.u32.totalorder %s985_s7, %s727_s27 }
  0x70   :  { %p733_p9 = scmp.lt.u32.totalorder %s727_s27, %s108_s26 }
  0x71   :  { %p732_p8 = por %p731_p7, %p730_p6 }
  0x73   :  { %p734_p10 = por %p733_p9, %p732_p8 }
  0x75   :  { %p735_p11 = pnand %p734_p10, %p728_p5 }
  0x77   :  { %738 = shalt.err (!%p735_p11)  }
  0x78   :  { %s739_s17 = scalar_lea.vmem %s113_s22, 64  ;;  %p744_p13 = scmp.lt.s32.totalorder %s113_s22, %s965_s12 }
  0x79   :  { %p740_p12 = scmp.ne.s32.totalorder %s113_s22, %s739_s17  ;;  %p745_p0 = scmp.lt.s32.totalorder %s994_s10, %s739_s17 }
  0x7b   :  { %p746_p1 = por %p745_p0, %p744_p13 }
  0x7d   :  { %p747_p2 = pnand %p746_p1, %p740_p12 }
  0x7f   :  { %750 = shalt.err (!%p747_p2)  }
  0x80   :  { %115 = dma.hbm_to_vmem [thread:$0]  %s108_s26, 64, %s113_s22, [#allocation3], %s907_s11, %s907_s11, %s908_s13 }
  0x81   :  { %s547_s25 = sld [smem:[#allocation5 + $0x4]]  ;;  %s910_s28 = smov [#allocation2 + $0x4]  }
  0x82   :  { %s127_s29 = sshll.u32 %s910_s28, 4  ;;  %s550_s5 = sld [smem:[#allocation5 + $0x5]]  ;;  %s1051_s29 = int_to_ptr.vmem [resolvable:$true] %s127_s29 }
  0x83   :  { %s911_s6 = smov [#allocation2 + $0x5]   ;;  %s1053_s8 = sld [smem:[#allocation5 + $0x6]] }
  0x84   :  { %s142_s0 = sshll.u32 %s911_s6, 4  ;;  %s912_s9 = smov [#allocation2 + $0x6]   ;;  %s1055_s0 = int_to_ptr.vmem [resolvable:$true] %s142_s0 }
  0x85   :  { %s1057_s14 = sshll.u32 %s912_s9, 4  ;;  %s1059_s1 = sld [smem:[#allocation5 + $0x7]]  ;;  %s158_s14 = int_to_ptr.vmem [resolvable:$true] %s1057_s14 }
  0x87   :  { %s117_s19 = sshrl.u32 %s547_s25, 3  ;;  %s118_s15 = sand.u32 7, %s547_s25  }
  0x88   :  { %s548_s18 = sshll.u32 %s117_s19, 5  ;;  %s132_s20 = sshrl.u32 %s550_s5, 3 }
  0x89   :  { %s120_s21 = sadd.s32 %s548_s18, %s118_s15  ;;  %s133_s22 = sand.u32 7, %s550_s5  }
  0x8a   :  { %s549_s23 = sshll.u32 %s120_s21, 4  ;;  %s551_s24 = sshll.u32 %s132_s20, 5 }
  0x8b   :  { %s123_s30 = scalar_lea.hbm %s1148_s2, %s549_s23  ;;  %s135_s16 = sadd.s32 %s551_s24, %s133_s22 }
  0x8c   :  { %s751_s17 = scalar_lea.hbm %s123_s30, 64  ;;  %p754_p4 = scmp.lt.u32.totalorder %s123_s30, %s1148_s2 }
  0x8d   :  { %p752_p3 = scmp.ne.s32.totalorder %s123_s30, %s751_s17  ;;  %p755_p5 = scmp.lt.u32.totalorder %s985_s7, %s751_s17 }
  0x8e   :  { %p757_p7 = scmp.lt.u32.totalorder %s751_s17, %s123_s30 }
  0x8f   :  { %p756_p6 = por %p755_p5, %p754_p4 }
  0x91   :  { %p758_p8 = por %p757_p7, %p756_p6 }
  0x93   :  { %p759_p9 = pnand %p758_p8, %p752_p3 }
  0x95   :  { %762 = shalt.err (!%p759_p9)  }
  0x96   :  { %s763_s25 = scalar_lea.vmem %s1051_s29, 64  ;;  %p768_p11 = scmp.lt.s32.totalorder %s1051_s29, %s965_s12 }
  0x97   :  { %p764_p10 = scmp.ne.s32.totalorder %s1051_s29, %s763_s25  ;;  %p769_p12 = scmp.lt.s32.totalorder %s994_s10, %s763_s25 }
  0x99   :  { %p770_p13 = por %p769_p12, %p768_p11 }
  0x9b   :  { %p771_p0 = pnand %p770_p13, %p764_p10 }
  0x9d   :  { %774 = shalt.err (!%p771_p0)  }
  0x9e   :  { %130 = dma.hbm_to_vmem [thread:$0]  %s123_s30, 64, %s1051_s29, [#allocation3], %s907_s11, %s907_s11, %s908_s13 }
  0x9f   :  { %s552_s5 = sshll.u32 %s135_s16, 4  ;;  %s147_s9 = sshrl.u32 %s1053_s8, 3 }
  0xa0   :  { %s138_s18 = scalar_lea.hbm %s1148_s2, %s552_s5  ;;  %s148_s20 = sand.u32 7, %s1053_s8  }
  0xa1   :  { %s775_s21 = scalar_lea.hbm %s138_s18, 64  ;;  %p778_p2 = scmp.lt.u32.totalorder %s138_s18, %s1148_s2 }
  0xa2   :  { %p776_p1 = scmp.ne.s32.totalorder %s138_s18, %s775_s21  ;;  %p779_p3 = scmp.lt.u32.totalorder %s985_s7, %s775_s21 }
  0xa3   :  { %p781_p5 = scmp.lt.u32.totalorder %s775_s21, %s138_s18 }
  0xa4   :  { %p780_p4 = por %p779_p3, %p778_p2 }
  0xa6   :  { %p782_p6 = por %p781_p5, %p780_p4 }
  0xa8   :  { %p783_p7 = pnand %p782_p6, %p776_p1 }
  0xaa   :  { %786 = shalt.err (!%p783_p7)  }
  0xab   :  { %s787_s29 = scalar_lea.vmem %s1055_s0, 64  ;;  %p792_p9 = scmp.lt.s32.totalorder %s1055_s0, %s965_s12 }
  0xac   :  { %p788_p8 = scmp.ne.s32.totalorder %s1055_s0, %s787_s29  ;;  %p793_p10 = scmp.lt.s32.totalorder %s994_s10, %s787_s29 }
  0xae   :  { %p794_p11 = por %p793_p10, %p792_p9 }
  0xb0   :  { %p795_p12 = pnand %p794_p11, %p788_p8 }
  0xb2   :  { %798 = shalt.err (!%p795_p12)  }
  0xb3   :  { %145 = dma.hbm_to_vmem [thread:$0]  %s138_s18, 64, %s1055_s0, [#allocation3], %s907_s11, %s907_s11, %s908_s13 }
  0xb4   :  { %s554_s8 = sshll.u32 %s147_s9, 5  ;;  %s162_s26 = sshrl.u32 %s1059_s1, 3 }
  0xb5   :  { %s150_s24 = sadd.s32 %s554_s8, %s148_s20  ;;  %s163_s30 = sand.u32 7, %s1059_s1  }
  0xb6   :  { %s555_s27 = sshll.u32 %s150_s24, 4  ;;  %s557_s6 = sshll.u32 %s162_s26, 5 }
  0xb7   :  { %s153_s28 = scalar_lea.hbm %s1148_s2, %s555_s27 }
  0xb8   :  { %s799_s25 = scalar_lea.hbm %s153_s28, 64  ;;  %p802_p0 = scmp.lt.u32.totalorder %s153_s28, %s1148_s2 }
  0xb9   :  { %p800_p13 = scmp.ne.s32.totalorder %s153_s28, %s799_s25  ;;  %p803_p1 = scmp.lt.u32.totalorder %s985_s7, %s799_s25 }
  0xba   :  { %p805_p3 = scmp.lt.u32.totalorder %s799_s25, %s153_s28 }
  0xbb   :  { %p804_p2 = por %p803_p1, %p802_p0 }
  0xbd   :  { %p806_p4 = por %p805_p3, %p804_p2 }
  0xbf   :  { %p807_p5 = pnand %p806_p4, %p800_p13 }
  0xc1   :  { %810 = shalt.err (!%p807_p5)  }
  0xc2   :  { %s811_s0 = scalar_lea.vmem %s158_s14, 64  ;;  %p816_p7 = scmp.lt.s32.totalorder %s158_s14, %s965_s12 }
  0xc3   :  { %p812_p6 = scmp.ne.s32.totalorder %s158_s14, %s811_s0  ;;  %p817_p8 = scmp.lt.s32.totalorder %s994_s10, %s811_s0 }
  0xc5   :  { %p818_p9 = por %p817_p8, %p816_p7 }
  0xc7   :  { %p819_p10 = pnand %p818_p9, %p812_p6 }
  0xc9   :  { %822 = shalt.err (!%p819_p10)  }
  0xca   :  { %160 = dma.hbm_to_vmem [thread:$0]  %s153_s28, 64, %s158_s14, [#allocation3], %s907_s11, %s907_s11, %s908_s13 }
  0xcb   :  { %s165_s1 = sadd.s32 %s557_s6, %s163_s30  ;;  %s913_s15 = smov [#allocation2 + $0x7]  }
  0xcc   :  { %s558_s9 = sshll.u32 %s165_s1, 4  ;;  %s172_s18 = sshll.u32 %s913_s15, 4  ;;  %s173_s18 = int_to_ptr.vmem [resolvable:$true] %s172_s18 }
  0xcd   :  { %s168_s22 = scalar_lea.hbm %s1148_s2, %s558_s9 }
  0xce   :  { %s823_s23 = scalar_lea.hbm %s168_s22, 64  ;;  %p826_p12 = scmp.lt.u32.totalorder %s168_s22, %s1148_s2 }
  0xcf   :  { %p824_p11 = scmp.ne.s32.totalorder %s168_s22, %s823_s23  ;;  %p827_p13 = scmp.lt.u32.totalorder %s985_s7, %s823_s23 }
  0xd0   :  { %p829_p1 = scmp.lt.u32.totalorder %s823_s23, %s168_s22 }
  0xd1   :  { %p828_p0 = por %p827_p13, %p826_p12 }
  0xd3   :  { %p830_p2 = por %p829_p1, %p828_p0 }
  0xd5   :  { %p831_p3 = pnand %p830_p2, %p824_p11 }
  0xd7   :  { %834 = shalt.err (!%p831_p3)  }
  0xd8   :  { %s835_s14 = scalar_lea.vmem %s173_s18, 64  ;;  %p840_p5 = scmp.lt.s32.totalorder %s173_s18, %s965_s12 }
  0xd9   :  { %p836_p4 = scmp.ne.s32.totalorder %s173_s18, %s835_s14  ;;  %p841_p6 = scmp.lt.s32.totalorder %s994_s10, %s835_s14 }
  0xdb   :  { %p842_p7 = por %p841_p6, %p840_p5 }
  0xdd   :  { %p843_p8 = pnand %p842_p7, %p836_p4 }
  0xdf   :  { %846 = shalt.err (!%p843_p8)  }
  0xe0   :  { %175 = dma.hbm_to_vmem [thread:$0]  %s168_s22, 64, %s173_s18, [#allocation3], %s907_s11, %s907_s11, %s908_s13 }
  0xe1   :  { %895 = dma.done.wait [#allocation3], 512 }
  0xe2   :  { %896 = vsyncadd [#allocation3], 4294966784  ;;  %v317_v1 = vld [vmem:[#allocation6] sm:$0xff]  ;;  %v324_v3 = vld [vmem:[#allocation6 + $0x8] sm:$0xff]  ;;  %s914_s2 = smov [#allocation10]   ;;  %s915_s7 = smov [#allocation9]  }
  0xe3   :  { %v318_v2 = vmul.f32 1.442695, %v317_v1  ;;  %v331_v4 = vld [vmem:[#allocation6 + $0x10] sm:$0xff]  ;;  %v325_v5 = vmul.f32 1.442695, %v324_v3  ;;  %v338_v7 = vld [vmem:[#allocation6 + $0x18] sm:$0xff] }
  0xe4   :  { %v332_v6 = vmul.f32 1.442695, %v331_v4  ;;  %v339_v8 = vmul.f32 1.442695, %v338_v7  ;;  %v320_v9 = vld [vmem:[#allocation2] sm:$0xff]  ;;  %v316_v10 = vld [vmem:[#allocation10] sm:$0xff] }
  0xe5   :  { %615 = vpow2.f32 %v318_v2  ;;  %v327_v11 = vld [vmem:[#allocation2 + $0x8] sm:$0xff]  ;;  %v315_v13 = vld [vmem:[#allocation9] sm:$0xff]  ;;  %v334_v14 = vld [vmem:[#allocation2 + $0x10] sm:$0xff]  ;;  %s363_s12 = sshll.u32 %s914_s2, 4  ;;  %s353_s10 = sshll.u32 %s915_s7, 4  ;;  %s364_s12 = int_to_ptr.vmem [resolvable:$true] %s363_s12  ;;  %s354_s10 = int_to_ptr.vmem [resolvable:$true] %s353_s10 }
  0xe6   :  { %617 = vpow2.f32 %v325_v5  ;;  %v341_v20 = vld [vmem:[#allocation2 + $0x18] sm:$0xff]  ;;  %s847_s11 = scalar_lea.vmem %s364_s12, 128  ;;  %p852_p10 = scmp.lt.s32.totalorder %s364_s12, %s364_s12 }
  0xe7   :  { %619 = vpow2.f32 %v332_v6  ;;  %p848_p9 = scmp.ne.s32.totalorder %s364_s12, %s847_s11  ;;  %p853_p11 = scmp.lt.s32.totalorder %s847_s11, %s847_s11 }
  0xe8   :  { %621 = vpow2.f32 %v339_v8 }
  0xe9   :  { %p854_p12 = por %p853_p11, %p852_p10 }
  0xeb   :  { %p855_p13 = pnand %p854_p12, %p848_p9 }
  0xef   :  { %v616_v12 = vpop.eup %615 }
  0xf0   :  { %v618_v15 = vpop.eup %617  ;;  %v321_v16 = vmul.f32 %v616_v12, %v320_v9  ;;  %v323_v17 = vadd.f32 %v616_v12, %v316_v10 }
  0xf1   :  { %v620_v18 = vpop.eup %619  ;;  %v328_v19 = vmul.f32 %v618_v15, %v327_v11 }
  0xf2   :  { %v622_v21 = vpop.eup %621  ;;  %v322_v22 = vadd.f32 %v321_v16, %v315_v13  ;;  %v335_v23 = vmul.f32 %v620_v18, %v334_v14  ;;  %v330_v24 = vadd.f32 %v618_v15, %v323_v17 }
  0xf3   :  { %v342_v26 = vmul.f32 %v622_v21, %v341_v20 }
  0xf4   :  { %v329_v25 = vadd.f32 %v328_v19, %v322_v22  ;;  %v337_v27 = vadd.f32 %v620_v18, %v330_v24 }
  0xf6   :  { %v336_v28 = vadd.f32 %v335_v23, %v329_v25  ;;  %v344_v29 = vadd.f32 %v622_v21, %v337_v27 }
  0xf8   :  { %v343_v30 = vadd.f32 %v342_v26, %v336_v28  ;;  %346 = vst [vmem:[#allocation10] sm:$0xff] %v344_v29 }
  0xf9   :  { %858 = shalt.err (!%p855_p13)
}
  0xfa   :  { %s859_s26 = scalar_lea.hbm %s1150_s4, 128 }
  0xfb   :  { %p860_p0 = scmp.ne.s32.totalorder %s1150_s4, %s859_s26  ;;  %p863_p1 = scmp.lt.u32.totalorder %s859_s26, %s1150_s4 }
  0xfd   :  { %p865_p2 = pnand %p863_p1, %p860_p0 }
  0xff   :  { %868 = shalt.err (!%p865_p2)
}
 0x100   :  { %366 = dma.vmem_to_hbm [thread:$0]  %s364_s12, 128, %s1150_s4, [#allocation11]   ;;  %345 = vst [vmem:[#allocation9] sm:$0xff] %v343_v30 }
 0x101   :  { %s869_s25 = scalar_lea.vmem %s354_s10, 128  ;;  %p874_p4 = scmp.lt.s32.totalorder %s354_s10, %s354_s10 }
 0x102   :  { %p870_p3 = scmp.ne.s32.totalorder %s354_s10, %s869_s25  ;;  %p875_p5 = scmp.lt.s32.totalorder %s869_s25, %s869_s25 }
 0x104   :  { %p876_p6 = por %p875_p5, %p874_p4 }
 0x106   :  { %p877_p7 = pnand %p876_p6, %p870_p3 }
 0x108   :  { %880 = shalt.err (!%p877_p7)
}
 0x109   :  { %s881_s0 = scalar_lea.hbm %s1149_s3, 128 }
 0x10a   :  { %p882_p8 = scmp.ne.s32.totalorder %s1149_s3, %s881_s0  ;;  %p885_p9 = scmp.lt.u32.totalorder %s881_s0, %s1149_s3 }
 0x10c   :  { %p887_p10 = pnand %p885_p9, %p882_p8 }
 0x10e   :  { %890 = shalt.err (!%p887_p10)
}
 0x10f   :  { %356 = dma.vmem_to_hbm [thread:$0]  %s354_s10, 128, %s1149_s3, [#allocation8]  }
 0x110   :  { %897 = dma.done.wait [#allocation8], 128  }
 0x111   :  { %898 = vsyncadd [#allocation8], 4294967168 }
 0x112   :  { %899 = dma.done.wait [#allocation11], 128  }
 0x113   :  { %900 = vsyncadd [#allocation11], 4294967168 }
 0x114   :  { %373 = vsyncpa [#allocation7], 1 }
 0x115   :  { %374 = vsyncpa [#allocation8], 1 }
 0x116   :  { %375 = vsyncpa [#allocation11], 1 }
 0x117   :  { %376 = vsyncmov [#allocation3] }
 0x11a   :  { %s377_s21 = vpop.sfrf %376 }
 0x11b   :  { %p582_p11 = scmp.ne.s32.totalorder %s377_s21, 0 }
 0x11d   :  { %381 = shalt.err (%p582_p11)  }
 0x11e   :  { %383 = vsyncmov [#allocation3 + $0x1] }
 0x121   :  { %s384_s22 = vpop.sfrf %383 }
 0x122   :  { %p583_p12 = scmp.ne.s32.totalorder %s384_s22, 0 }
 0x124   :  { %388 = shalt.err (%p583_p12)  }

</bundles_post_ra>
